<compile_context>
chip_gen: v7x
topology: tpu7x:2x2x1
jax: 0.10.0
libtpu: 0.0.40
codegen_flags: <defaults>
</compile_context>

<pallas_src>
import jax
import jax.numpy as jnp
from jax.experimental import pallas as pl
from jax.experimental.pallas import tpu as pltpu


def _round_up(a, m):
    return ((a + m - 1) // m) * m


# --------------------------------------------------------------------------- #
# Pallas kernel: fused (Linear -> bias -> ReLU) x 2 + running max over neighbors
#   x_ref : (K, tile, Cin)  bf16   neighbor-major grouped features
#   w*_ref: (Cin, C*)       bf16   1x1-conv weights with the BN scale pre-folded
#   b*_ref: (1, C*)         f32    folded conv-bias / BN shift
#   o_ref : (tile, C2)             max over the K neighbors
# --------------------------------------------------------------------------- #
def _make_mlp_max_kernel(k_neighbors, sub_m, chunk):
    def kernel(x_ref, w1_ref, b1_ref, w2_ref, b2_ref, o_ref):
        tile, c2 = o_ref.shape
        c1 = w1_ref.shape[1]
        w1 = w1_ref[...]
        w2 = w2_ref[...]
        # Hoist bias broadcasts out of the unrolled loops (JAX does not CSE
        # broadcast_in_dim; the K-unroll would otherwise re-materialize them).
        b1b = jnp.broadcast_to(b1_ref[...], (chunk * sub_m, c1))
        b2b = jnp.broadcast_to(b2_ref[...], (chunk * sub_m, c2))

        for m in range(tile // sub_m):  # static unroll over M sub-tiles
            # ReLU output is >= 0, so a zero init of the running max is exact.
            # NOTE: if the epilogue ever loses the ReLU, switch to a -inf init.
            acc = jnp.zeros((sub_m, c2), jnp.float32)
            for k0 in range(0, k_neighbors, chunk):  # neighbors, `chunk` per matmul
                xk = x_ref[k0:k0 + chunk, m * sub_m:(m + 1) * sub_m, :]
                # leading-dim collapse (sub_m is a multiple of 16 -> layout-free)
                xk = xk.reshape(chunk * sub_m, xk.shape[-1])
                # layer 1: 1x1 conv (bf16 MXU matmul, f32 acc) + folded bias + ReLU
                h = jnp.dot(xk, w1, preferred_element_type=jnp.float32)
                h = jnp.maximum(h + b1b, 0.0)
                # layer 2
                h = jnp.dot(h.astype(jnp.bfloat16), w2,
                            preferred_element_type=jnp.float32)
                h = jnp.maximum(h + b2b, 0.0)
                # max over the `chunk` neighbor slabs, then fold into the running max;
                # the live intermediate stays at (sub_m, C2), vreg-resident.
                hmax = h[0:sub_m]
                for c in range(1, chunk):
                    hmax = jnp.maximum(hmax, h[c * sub_m:(c + 1) * sub_m])
                acc = jnp.maximum(acc, hmax)
            o_ref[m * sub_m:(m + 1) * sub_m, :] = acc.astype(o_ref.dtype)

    return kernel


def mlp_max_pallas(x_kgc, params, *, tile_max=512, min_steps=4,
                   out_dtype=jnp.float32, sub_m=None, chunk=None):
    """x_kgc: [K, G, Cin] neighbor-major grouped features. Returns [G, Cout_last]."""
    (w1, b1), (w2, b2) = params
    K, G, cin = x_kgc.shape
    c1 = w1.shape[1]
    c2 = w2.shape[1]
    out_itemsize = jnp.dtype(out_dtype).itemsize

    # ---- tile / grid selection ------------------------------------------------
    #  * multiple of 16: bf16 packs two rows per sublane -> avoids packed relayout
    #  * capped so the grid has >= min_steps steps: keeps the input DMA double-
    #    buffered (overlapped with compute) and gives both v7x TensorCores work
    #  * capped by a VMEM working-set budget that fits v5e's 16 MiB default scope
    tile = _round_up(max(16, min(tile_max, -(-G // min_steps))), 16)

    def _step_vmem_bytes(t):
        lane = lambda c: _round_up(c, 128)
        x_b = 2 * K * t * lane(cin) * 2                    # double-buffered bf16 input
        o_b = 2 * t * lane(c2) * out_itemsize              # double-buffered output
        w_b = 2 * (_round_up(cin, 16) * lane(c1) + _round_up(c1, 16) * lane(c2)) * 2
        b_b = 2 * 16 * (lane(c1) + lane(c2)) * 4
        return x_b + o_b + w_b + b_b

    VMEM_BUDGET = 10 << 20
    while tile > 16 and _step_vmem_bytes(tile) > VMEM_BUDGET:
        tile = max(16, _round_up(tile // 2, 16))
    vmem_limit = int(min(64 << 20, max(32 << 20, 2 * _step_vmem_bytes(tile))))

    Gp = _round_up(G, tile)
    x = x_kgc.astype(jnp.bfloat16)
    if Gp != G:
        # Zero-padded groups produce garbage rows (ReLU(bias) etc.) sliced off below.
        x = jnp.pad(x, ((0, 0), (0, Gp - G), (0, 0)))

    # ---- in-kernel sub-tiling ---------------------------------------------------
    # sub_m rows per vreg-resident accumulator (~16-24 vregs of f32 at C2 wide).
    if sub_m is None:
        sub_m = max(16, min(tile, (24576 // max(c2, 1)) // 16 * 16))
        while tile % sub_m != 0:
            sub_m -= 16
    assert sub_m >= 16 and sub_m % 16 == 0 and tile % sub_m == 0
    # chunk neighbors per MXU push, bounded by the (chunk*sub_m, C) f32 live set.
    if chunk is None:
        chunk = 1
        for c in (4, 2):
            if K % c == 0 and c * sub_m * max(c1, c2) * 4 <= (128 << 10):
                chunk = c
                break
    assert K % chunk == 0

    kernel = _make_mlp_max_kernel(K, sub_m, chunk)
    grid = (Gp // tile,)

    # TODO(synk): single-buffer the constant-index weight/bias operands
    #             (pipeline_mode=pl.Buffered(1)) and deepen the x-input pipeline on
    #             v6e (pl.Buffered(3)); left for a pipeline_mode sweep.
    out = pl.pallas_call(
        kernel,
        out_shape=jax.ShapeDtypeStruct((Gp, c2), out_dtype),
        grid_spec=pltpu.PrefetchScalarGridSpec(
            num_scalar_prefetch=0,
            grid=grid,
            in_specs=[
                pl.BlockSpec((K, tile, cin), lambda i: (0, i, 0)),
                pl.BlockSpec((cin, c1), lambda i: (0, 0)),
                pl.BlockSpec((1, c1), lambda i: (0, 0)),
                pl.BlockSpec((c1, c2), lambda i: (0, 0)),
                pl.BlockSpec((1, c2), lambda i: (0, 0)),
            ],
            out_specs=pl.BlockSpec((tile, c2), lambda i: (i, 0)),
        ),
        # >= 2 (ideally >= 4) grid steps + "parallel": keeps the pipeline double-
        # buffered and lets v7x shard the grid across its 2 TensorCores.
        compiler_params=pltpu.CompilerParams(
            dimension_semantics=("parallel",),
            vmem_limit_bytes=vmem_limit,
        ),
    )(x, w1.astype(jnp.bfloat16), b1, w2.astype(jnp.bfloat16), b2)
    return out[:G]


# --------------------------------------------------------------------------- #
# Plain-JAX glue: FPS + kNN grouping (data-dependent indexing, no clean Pallas fit)
# --------------------------------------------------------------------------- #
def farthest_point_sample(xyz, npoint):
    # Deterministic start at index 0 (the torch reference uses a random start).
    B, N, _ = xyz.shape

    def body(i, state):
        distance, farthest, centroids = state
        centroids = centroids.at[:, i].set(farthest)
        centroid = jnp.take_along_axis(xyz, farthest[:, None, None], axis=1)  # (B,1,3)
        d = jnp.sum((xyz - centroid) ** 2, axis=-1)                           # (B,N)
        distance = jnp.minimum(distance, d)
        farthest = jnp.argmax(distance, axis=-1).astype(jnp.int32)
        return distance, farthest, centroids

    state = (
        jnp.full((B, N), 1e10, dtype=xyz.dtype),
        jnp.zeros((B,), dtype=jnp.int32),
        jnp.zeros((B, npoint), dtype=jnp.int32),
    )
    _, _, centroids = jax.lax.fori_loop(0, npoint, body, state)
    return centroids


def sample_and_group_knn(xyz, points, npoint, nsample):
    """Returns new_xyz [B,S,3] and neighbor-major grouped features [K, B*S, 3+D] (bf16)."""
    B, N, _ = xyz.shape
    S = npoint
    fps_idx = farthest_point_sample(xyz, npoint)                               # (B,S)
    new_xyz = jnp.take_along_axis(xyz, fps_idx[..., None], axis=1)             # (B,S,3)
    dists = jnp.sum((new_xyz[:, :, None, :] - xyz[:, None, :, :]) ** 2, -1)    # (B,S,N)
    # top_k (O(N*k)) instead of a full argsort; ties may order differently than torch.
    _, idx = jax.lax.top_k(-dists, nsample)                                    # (B,S,K)
    # Neighbor-major gather: transpose the SMALL index tensor (not the gathered data)
    # so the K-times-duplicated grouped tensor is produced directly in the kernel's
    # (K, G, Cin) layout and in bf16 -> no pad/transpose HBM round trip, half the bytes.
    idx_t = jnp.transpose(idx, (2, 0, 1))                                      # (K,B,S)
    gather_b = jax.vmap(lambda a, i: a[i])                                     # per batch
    gather_kb = jax.vmap(gather_b, in_axes=(None, 0))                          # per neighbor
    grouped_xyz = gather_kb(xyz, idx_t)                                        # (K,B,S,3)
    grouped_xyz_norm = (grouped_xyz - new_xyz[None]).astype(jnp.bfloat16)
    grouped_points = gather_kb(points.astype(jnp.bfloat16), idx_t)             # (K,B,S,D)
    grouped = jnp.concatenate([grouped_xyz_norm, grouped_points], -1)          # (K,B,S,3+D)
    return new_xyz, grouped.reshape(nsample, B * S, -1)


def transition_down(xyz, points, params, npoint, nneighbor):
    B = xyz.shape[0]
    new_xyz, grouped_kgc = sample_and_group_knn(xyz, points, npoint, nneighbor)
    feats = mlp_max_pallas(grouped_kgc, params)
    return new_xyz, feats.reshape(B, npoint, -1)


# --------------------------------------------------------------------------- #
# Deterministic parameter construction (Conv2d 1x1 + BatchNorm2d, eval-mode BN).
# The BN scale is folded into the weights; only a per-channel shift remains.
# --------------------------------------------------------------------------- #
def init_params(key, channels, eps=1e-5):
    # TODO(synk): BatchNorm2d is implemented in inference mode (running stats folded
    # into the weights/shift); torch training-mode batch statistics are not reproduced.
    assert len(channels) == 3, "fused kernel expects exactly 2 MLP layers"
    params = []
    cin = channels[0]
    for cout in channels[1:]:
        key, kw, kb, kg, kbt, km, kv = jax.random.split(key, 7)
        w = 0.1 * jax.random.normal(kw, (cin, cout), jnp.float32)
        conv_b = 0.1 * jax.random.normal(kb, (cout,), jnp.float32)
        gamma = 1.0 + 0.1 * jax.random.normal(kg, (cout,), jnp.float32)
        beta = 0.1 * jax.random.normal(kbt, (cout,), jnp.float32)
        rmean = 0.1 * jax.random.normal(km, (cout,), jnp.float32)
        rvar = 1.0 + 0.5 * jax.random.uniform(kv, (cout,), jnp.float32)
        scale = gamma / jnp.sqrt(rvar + eps)
        shift = (conv_b - rmean) * scale + beta
        # fold BN scale into the 1x1-conv weight; keep only the shift as a bias
        params.append((w * scale[None, :], shift[None, :]))
        cin = cout
    return params


def ref_mlp_max(x_kgc, params):
    """Pure-JAX reference mirroring the kernel's bf16-operand / f32-accumulate numerics."""
    # NOTE: matmul operands are bf16 (as in the kernel), so deviation vs a pure-f32
    # torch reference is ~1e-2 relative; this check pins the kernel, not the dtype.
    (w1, b1), (w2, b2) = params
    h = jnp.einsum("kgc,cd->kgd", x_kgc.astype(jnp.bfloat16), w1.astype(jnp.bfloat16),
                   preferred_element_type=jnp.float32)
    h = jnp.maximum(h + b1, 0.0)
    h = jnp.einsum("kgd,de->kge", h.astype(jnp.bfloat16), w2.astype(jnp.bfloat16),
                   preferred_element_type=jnp.float32)
    h = jnp.maximum(h + b2, 0.0)
    return jnp.max(h, axis=0)


if __name__ == "__main__":
    key = jax.random.PRNGKey(0)
    # Small shapes consistent with Backbone block 0:
    #   points are the 32-d features; TransitionDown(N//4, nneighbor, [32+3, 64, 64]).
    B, N, D = 2, 64, 32
    npoint, nneighbor = 16, 8
    channels = [D + 3, 64, 64]             # channels[0] = point-feature-dim + 3

    kx, kp, kparam = jax.random.split(key, 3)
    xyz = jax.random.normal(kx, (B, N, 3), jnp.float32)
    points = jax.random.normal(kp, (B, N, D), jnp.float32)
    params = init_params(kparam, channels)

    new_xyz, new_points = transition_down(xyz, points, params, npoint, nneighbor)
    jax.block_until_ready((new_xyz, new_points))

    assert new_xyz.shape == (B, npoint, 3)
    assert new_points.shape == (B, npoint, channels[-1])

    # sanity-check the fused Pallas MLP+max against a pure-JAX reference
    _, grouped = sample_and_group_knn(xyz, points, npoint, nneighbor)   # (K, G, Cin) bf16
    ref_flat = ref_mlp_max(grouped, params)                             # (G, C2)
    ref = ref_flat.reshape(B, npoint, -1)
    assert jnp.allclose(new_points, ref, rtol=1e-2, atol=1e-2)

    # exercise the multi-subtile + neighbor-chunk path with forced small sub-tiles
    feats_sub = mlp_max_pallas(grouped, params, tile_max=32, min_steps=2,
                               sub_m=16, chunk=2)
    jax.block_until_ready(feats_sub)
    assert jnp.allclose(feats_sub.reshape(B, npoint, -1), ref, rtol=1e-2, atol=1e-2)

    # exercise the padding path (G not a multiple of the 16-row tile)
    g_odd = 25
    feats_pad = mlp_max_pallas(grouped[:, :g_odd], params, tile_max=16)
    jax.block_until_ready(feats_pad)
    assert feats_pad.shape == (g_odd, channels[-1])
    assert jnp.allclose(feats_pad, ref_flat[:g_odd], rtol=1e-2, atol=1e-2)

    # exercise the bf16-output path (halves writeback when downstream consumes bf16)
    feats_bf16 = mlp_max_pallas(grouped, params, out_dtype=jnp.bfloat16)
    jax.block_until_ready(feats_bf16)
    assert jnp.allclose(feats_bf16.astype(jnp.float32).reshape(B, npoint, -1), ref,
                        rtol=2e-2, atol=2e-2)

    print("KERNEL_OK")
</pallas_src>

<mosaic_0001>
module attributes {stable_mosaic.version = 11 : i64} {
  func.func @kernel(%arg0: i32, %arg1: memref<8x16x35xbf16, #tpu.memory_space<vmem>>, %arg2: memref<35x64xbf16, #tpu.memory_space<vmem>>, %arg3: memref<1x64xf32, #tpu.memory_space<vmem>>, %arg4: memref<64x64xbf16, #tpu.memory_space<vmem>>, %arg5: memref<1x64xf32, #tpu.memory_space<vmem>>, %arg6: memref<16x64xf32, #tpu.memory_space<vmem>>) attributes {dimension_semantics = [#tpu.dimension_semantics<parallel>], iteration_bounds = array<i64: 2>, scalar_prefetch = 0 : i64, scratch_operands = 0 : i64, tpu.core_type = #tpu.core_type<tc>, window_params = [{transform_indices = @transform_0, window_bounds = array<i64: 8, 16, 35>}, {pipeline_mode = #tpu.pipeline_mode<synchronous>, transform_indices = @transform_1, window_bounds = array<i64: 35, 64>}, {pipeline_mode = #tpu.pipeline_mode<synchronous>, transform_indices = @transform_2, window_bounds = array<i64: 1, 64>}, {pipeline_mode = #tpu.pipeline_mode<synchronous>, transform_indices = @transform_3, window_bounds = array<i64: 64, 64>}, {pipeline_mode = #tpu.pipeline_mode<synchronous>, transform_indices = @transform_4, window_bounds = array<i64: 1, 64>}, {transform_indices = @transform_5, window_bounds = array<i64: 16, 64>}]} {
    %c0 = arith.constant 0 : index
    %c0_0 = arith.constant 0 : index
    %0 = vector.load %arg2[%c0, %c0_0] : memref<35x64xbf16, #tpu.memory_space<vmem>>, vector<35x64xbf16>
    %c0_1 = arith.constant 0 : index
    %c0_2 = arith.constant 0 : index
    %1 = vector.load %arg4[%c0_1, %c0_2] : memref<64x64xbf16, #tpu.memory_space<vmem>>, vector<64x64xbf16>
    %c0_3 = arith.constant 0 : index
    %c0_4 = arith.constant 0 : index
    %2 = vector.load %arg3[%c0_3, %c0_4] : memref<1x64xf32, #tpu.memory_space<vmem>>, vector<1x64xf32>
    %3 = vector.shape_cast %2 : vector<1x64xf32> to vector<1x64xf32>
    %4 = vector.broadcast %3 : vector<1x64xf32> to vector<64x64xf32>
    %c0_5 = arith.constant 0 : index
    %c0_6 = arith.constant 0 : index
    %5 = vector.load %arg5[%c0_5, %c0_6] : memref<1x64xf32, #tpu.memory_space<vmem>>, vector<1x64xf32>
    %6 = vector.shape_cast %5 : vector<1x64xf32> to vector<1x64xf32>
    %7 = vector.broadcast %6 : vector<1x64xf32> to vector<64x64xf32>
    %cst = arith.constant 0.000000e+00 : f32
    %8 = vector.broadcast %cst : f32 to vector<16x64xf32>
    %c0_7 = arith.constant 0 : index
    %c0_8 = arith.constant 0 : index
    %c0_9 = arith.constant 0 : index
    %9 = vector.load %arg1[%c0_7, %c0_8, %c0_9] : memref<8x16x35xbf16, #tpu.memory_space<vmem>>, vector<4x16x35xbf16>
    %10 = vector.shape_cast %9 : vector<4x16x35xbf16> to vector<64x35xbf16>
    %cst_10 = arith.constant dense<0.000000e+00> : vector<64x64xf32>
    %11 = tpu.matmul %10, %0, %cst_10 {dimension_numbers = #tpu.dot_dimension_numbers<[1], [0], [0], [1], [0, 0, 1, 1], [], []>} : vector<64x35xbf16>, vector<35x64xbf16>, vector<64x64xf32> -> vector<64x64xf32>
    %12 = arith.addf %11, %4 : vector<64x64xf32>
    %cst_11 = arith.constant 0.000000e+00 : f32
    %13 = vector.broadcast %cst_11 : f32 to vector<64x64xf32>
    %14 = arith.maximumf %12, %13 : vector<64x64xf32>
    %15 = arith.truncf %14 : vector<64x64xf32> to vector<64x64xbf16>
    %cst_12 = arith.constant dense<0.000000e+00> : vector<64x64xf32>
    %16 = tpu.matmul %15, %1, %cst_12 {dimension_numbers = #tpu.dot_dimension_numbers<[1], [0], [0], [1], [0, 0, 1, 1], [], []>} : vector<64x64xbf16>, vector<64x64xbf16>, vector<64x64xf32> -> vector<64x64xf32>
    %17 = arith.addf %16, %7 : vector<64x64xf32>
    %cst_13 = arith.constant 0.000000e+00 : f32
    %18 = vector.broadcast %cst_13 : f32 to vector<64x64xf32>
    %19 = arith.maximumf %17, %18 : vector<64x64xf32>
    %20 = vector.extract_strided_slice %19 {offsets = [0, 0], sizes = [16, 64], strides = [1, 1]} : vector<64x64xf32> to vector<16x64xf32>
    %21 = vector.extract_strided_slice %19 {offsets = [16, 0], sizes = [16, 64], strides = [1, 1]} : vector<64x64xf32> to vector<16x64xf32>
    %22 = arith.maximumf %20, %21 : vector<16x64xf32>
    %23 = vector.extract_strided_slice %19 {offsets = [32, 0], sizes = [16, 64], strides = [1, 1]} : vector<64x64xf32> to vector<16x64xf32>
    %24 = arith.maximumf %22, %23 : vector<16x64xf32>
    %25 = vector.extract_strided_slice %19 {offsets = [48, 0], sizes = [16, 64], strides = [1, 1]} : vector<64x64xf32> to vector<16x64xf32>
    %26 = arith.maximumf %24, %25 : vector<16x64xf32>
    %27 = arith.maximumf %8, %26 : vector<16x64xf32>
    %c4 = arith.constant 4 : index
    %c0_14 = arith.constant 0 : index
    %c0_15 = arith.constant 0 : index
    %28 = vector.load %arg1[%c4, %c0_14, %c0_15] : memref<8x16x35xbf16, #tpu.memory_space<vmem>>, vector<4x16x35xbf16>
    %29 = vector.shape_cast %28 : vector<4x16x35xbf16> to vector<64x35xbf16>
    %cst_16 = arith.constant dense<0.000000e+00> : vector<64x64xf32>
    %30 = tpu.matmul %29, %0, %cst_16 {dimension_numbers = #tpu.dot_dimension_numbers<[1], [0], [0], [1], [0, 0, 1, 1], [], []>} : vector<64x35xbf16>, vector<35x64xbf16>, vector<64x64xf32> -> vector<64x64xf32>
    %31 = arith.addf %30, %4 : vector<64x64xf32>
    %cst_17 = arith.constant 0.000000e+00 : f32
    %32 = vector.broadcast %cst_17 : f32 to vector<64x64xf32>
    %33 = arith.maximumf %31, %32 : vector<64x64xf32>
    %34 = arith.truncf %33 : vector<64x64xf32> to vector<64x64xbf16>
    %cst_18 = arith.constant dense<0.000000e+00> : vector<64x64xf32>
    %35 = tpu.matmul %34, %1, %cst_18 {dimension_numbers = #tpu.dot_dimension_numbers<[1], [0], [0], [1], [0, 0, 1, 1], [], []>} : vector<64x64xbf16>, vector<64x64xbf16>, vector<64x64xf32> -> vector<64x64xf32>
    %36 = arith.addf %35, %7 : vector<64x64xf32>
    %cst_19 = arith.constant 0.000000e+00 : f32
    %37 = vector.broadcast %cst_19 : f32 to vector<64x64xf32>
    %38 = arith.maximumf %36, %37 : vector<64x64xf32>
    %39 = vector.extract_strided_slice %38 {offsets = [0, 0], sizes = [16, 64], strides = [1, 1]} : vector<64x64xf32> to vector<16x64xf32>
    %40 = vector.extract_strided_slice %38 {offsets = [16, 0], sizes = [16, 64], strides = [1, 1]} : vector<64x64xf32> to vector<16x64xf32>
    %41 = arith.maximumf %39, %40 : vector<16x64xf32>
    %42 = vector.extract_strided_slice %38 {offsets = [32, 0], sizes = [16, 64], strides = [1, 1]} : vector<64x64xf32> to vector<16x64xf32>
    %43 = arith.maximumf %41, %42 : vector<16x64xf32>
    %44 = vector.extract_strided_slice %38 {offsets = [48, 0], sizes = [16, 64], strides = [1, 1]} : vector<64x64xf32> to vector<16x64xf32>
    %45 = arith.maximumf %43, %44 : vector<16x64xf32>
    %46 = arith.maximumf %27, %45 : vector<16x64xf32>
    %c0_20 = arith.constant 0 : index
    %c0_21 = arith.constant 0 : index
    %47 = vector.load %arg6[%c0_20, %c0_21] : memref<16x64xf32, #tpu.memory_space<vmem>>, vector<16x64xf32>
    tpu.vector_store %arg6[%c0_20, %c0_21], %46 {strides = array<i32>} : memref<16x64xf32, #tpu.memory_space<vmem>>, vector<16x64xf32>,
    return
  }
  func.func @transform_0(%arg0: i32) -> (i32, i32, i32) {
    %c0_i32 = arith.constant 0 : i32
    %c0_i32_0 = arith.constant 0 : i32
    %c0_i32_1 = arith.constant 0 : i32
    return %c0_i32, %arg0, %c0_i32_0 : i32, i32, i32
  }
  func.func @transform_1(%arg0: i32) -> (i32, i32) {
    %c0_i32 = arith.constant 0 : i32
    %c0_i32_0 = arith.constant 0 : i32
    %c0_i32_1 = arith.constant 0 : i32
    return %c0_i32, %c0_i32_0 : i32, i32
  }
  func.func @transform_2(%arg0: i32) -> (i32, i32) {
    %c0_i32 = arith.constant 0 : i32
    %c0_i32_0 = arith.constant 0 : i32
    %c0_i32_1 = arith.constant 0 : i32
    return %c0_i32, %c0_i32_0 : i32, i32
  }
  func.func @transform_3(%arg0: i32) -> (i32, i32) {
    %c0_i32 = arith.constant 0 : i32
    %c0_i32_0 = arith.constant 0 : i32
    %c0_i32_1 = arith.constant 0 : i32
    return %c0_i32, %c0_i32_0 : i32, i32
  }
  func.func @transform_4(%arg0: i32) -> (i32, i32) {
    %c0_i32 = arith.constant 0 : i32
    %c0_i32_0 = arith.constant 0 : i32
    %c0_i32_1 = arith.constant 0 : i32
    return %c0_i32, %c0_i32_0 : i32, i32
  }
  func.func @transform_5(%arg0: i32) -> (i32, i32) {
    %c0_i32 = arith.constant 0 : i32
    %c0_i32_0 = arith.constant 0 : i32
    return %arg0, %c0_i32 : i32, i32
  }
}

</mosaic_0001>

<bundles_post_ra>
// kernel: tpu_custom_call.1
= control target key start
LH: loop header
LB: loop body
LE: loop exit
PB: predicated region body
PF: predicated region fallthrough
CT: control target
= control target key end

     0   :  { %10 = vsyncpa [#allocation3], 0  ;;  %s1593_s0 = inlined_call_operand.hbm [shape: bf16[8,32,35], index: 0, kind: input, shape index: {}]   ;;  %s1594_s1 = inlined_call_operand.hbm [shape: bf16[35,64], index: 1, kind: input, shape index: {}]   ;;  %s1595_s2 = inlined_call_operand.vmem [shape: f32[1,64], index: 2, kind: input, shape index: {}]   ;;  %s1596_s3 = inlined_call_operand.hbm [shape: bf16[64,64], index: 3, kind: input, shape index: {}]   ;;  %s1597_s4 = inlined_call_operand.vmem [shape: f32[1,64], index: 4, kind: input, shape index: {}]   ;;  %s1598_s5 = inlined_call_operand.hbm [shape: f32[32,64], index: 5, kind: output, shape index: {}]  }
   0x1   :  { %12 = vsyncpa [#allocation3 + $0x1], 0 }
   0x2   :  { %13 = vsyncpa [#allocation6], 0 }
   0x3   :  { %14 = vsyncpa [#allocation4], 0 }
   0x4   :  { %16 = vsyncpa [#allocation4 + $0x1], 0  ;;  %s1324_s18 = smov 0   ;;  %s1326_s19 = smov 0  }
   0x5   :  { %s1328_s20 = smov 0   ;;  %s1330_s21 = smov 0  }
   0x6 LB: > { %s1345_s22 = sadd.s32 4294967295, %s1278_s21   ;;  %s904_s23 = sadd.s32 4294967294, %s1278_s21   ;;  %s1278_s21 = sphi %s1330_s21, %s1622_s21   ;;  %s1274_s20 = sphi %s1328_s20, %s1621_s20   ;;  %s1270_s19 = sphi %s1326_s19, %s1620_s19   ;;  %s1266_s18 = sphi %s1324_s18, %s1619_s18  }
   0x7   : > { %s1349_s24 = sadd.s32 1, %s1278_s21   ;;  %s29_s25 = sadd.s32 1, %s1274_s20 }
   0x8   : > { %s26_s26 = ssub.s32 %s1278_s21, %s1349_s24  ;;  %p36_p0 = scmp.ne.s32.totalorder %s1274_s20, %s1270_s19 }
   0x9   : > { %p27_p1 = scmp.eq.s32.totalorder %s26_s26, 0  ;;  %p37_p2 = scmp.eq.s32.totalorder %s1278_s21, 0 }
   0xa   : > { %p42_p3 = scmp.ne.s32.totalorder %s1270_s19, %s1266_s18  ;;  %p1599_p4 = scmp.eq.s32.totalorder %s1345_s22, 0 }
   0xb   : > { %s1361_s27 = scalar_select %p27_p1, %s1274_s20, %s29_s25  }
   0xc   : > { %p1363_p5 = por %p37_p2, %p36_p0  ;;  %p1369_p6 = por %p1599_p4, %p42_p3 }
   0xd   : > { %1604 = sst [smem:[#allocation15_spill]] %s1361_s27  ;;  %p150_p7 = scmp.eq.s32.totalorder %s1345_s22, 1 }
   0xe   : > { %s1605_s28 = scalar_select %p1363_p5, 1, 0 }
   0xf   : > { %s1606_s29 = scalar_select %p1369_p6, 1, 0 }
  0x10   : > { %p156_p8 = scmp.eq.s32.totalorder %s904_s23, 1  ;;  %p905_p9 = scmp.ge.s32.totalorder %s1278_s21, 1 }
  0x11   : > { %p163_p10 = scmp.lt.s32.totalorder %s1278_s21, 3  ;;  %p1376_p11 = por %p150_p7, %p36_p0 }
  0x12   : > { %p1380_p12 = por %p156_p8, %p42_p3  ;;  %s1280_s8 = smov [#allocation5]  }
  0x13   : > { %s1607_s30 = scalar_select %p1376_p11, 1, 0 }
  0x14   : > { %s1608_s6 = scalar_select %p1380_p12, 1, 0 }
  0x15   : > { %p1384_p13 = pnand %p905_p9, %p163_p10  ;;  %s175_s9 = sshll.u32 %s1280_s8, 4  ;;  %s176_s9 = int_to_ptr.vmem [resolvable:$true] %s175_s9 }
  0x16   : > { %s1281_s11 = smov [#allocation7]   ;;  %s1152_s15 = scalar_lea.hbm %s1594_s1, 320 }
  0x17   : > { %s1609_s7 = scalar_select %p1384_p13, 1, 0 }
  0x18   : > { %p1076_p1 = pneg %p1384_p13  ;;  %s191_s12 = sshll.u32 %s1281_s11, 4  ;;  %s1396_s12 = int_to_ptr.vmem [resolvable:$true] %s191_s12 }
  0x19   : > { %p1153_p0 = scmp.ne.s32.totalorder %s1594_s1, %s1152_s15  ;;  %p1159_p9 = scmp.lt.u32.totalorder %s1152_s15, %s1594_s1 }
  0x1a   : > { %p1392_p2 = pnand %p1076_p1, %p1599_p4 }
  0x1c   : > { %p1154_p3 = pneg %p1392_p2 }
  0x1e   : > { %p1155_p7 = pnand %p1154_p3, %p1153_p0 }
  0x20   : > { %p1156_p8 = pneg %p1155_p7 }
  0x22   : > { %p1161_p10 = pnand %p1159_p9, %p1156_p8 }
  0x24   : > { %1164 = shalt.err (!%p1161_p10)
}
  0x25   : > { %s1165_s26 = scalar_lea.vmem %s176_s9, 320  ;;  %p1173_p11 = scmp.lt.s32.totalorder %s176_s9, %s176_s9 }
  0x26   : > { %p1166_p1 = scmp.ne.s32.totalorder %s176_s9, %s1165_s26  ;;  %p1174_p6 = scmp.lt.s32.totalorder %s1165_s26, %s1165_s26 }
  0x28   : > { %p1168_p4 = pnand %p1166_p1, %p1154_p3  ;;  %p1175_p13 = por %p1174_p6, %p1173_p11 }
  0x2a   : > { %p1169_p12 = pneg %p1168_p4 }
  0x2c   : > { %p1176_p5 = pnand %p1175_p13, %p1169_p12 }
  0x2e   : > { %1179 = shalt.err (!%p1176_p5)
}
  0x2f   : > { %s1282_s8 = smov 64   ;;  %s1283_s11 = smov 4  }
  0x30   : > { %1079 = dma.hbm_to_vmem [thread:$0]  (!%p1392_p2), %s1594_s1, 320, %s176_s9, [#allocation6], %s1282_s8, %s1282_s8, %s1283_s11  }
  0x31   : > { %s1180_s17 = scalar_lea.hbm %s1596_s3, 512 }
  0x32   : > { %p1181_p4 = scmp.ne.s32.totalorder %s1596_s3, %s1180_s17  ;;  %p1187_p11 = scmp.lt.u32.totalorder %s1180_s17, %s1596_s3 }
  0x34   : > { %p1183_p5 = pnand %p1181_p4, %p1154_p3 }
  0x36   : > { %p1184_p6 = pneg %p1183_p5 }
  0x38   : > { %p1189_p12 = pnand %p1187_p11, %p1184_p6 }
  0x3a   : > { %1192 = shalt.err (!%p1189_p12)
}
  0x3b   : > { %s1193_s9 = scalar_lea.vmem %s1396_s12, 512  ;;  %p1201_p8 = scmp.lt.s32.totalorder %s1396_s12, %s1396_s12 }
  0x3c   : > { %p1194_p13 = scmp.ne.s32.totalorder %s1396_s12, %s1193_s9  ;;  %p1202_p9 = scmp.lt.s32.totalorder %s1193_s9, %s1193_s9 }
  0x3e   : > { %p1196_p0 = pnand %p1194_p13, %p1154_p3  ;;  %p1203_p10 = por %p1202_p9, %p1201_p8 }
  0x40   : > { %p1197_p7 = pneg %p1196_p0 }
  0x42   : > { %p1204_p1 = pnand %p1203_p10, %p1197_p7 }
  0x44   : > { %1207 = shalt.err (!%p1204_p1)
}
  0x45   : > { %1082 = dma.hbm_to_vmem [thread:$0]  (!%p1392_p2), %s1596_s3, 512, %s1396_s12, [#allocation6], %s1282_s8, %s1282_s8, %s1283_s11  }
  0x46   : > { %p908_p4 = scmp.ge.s32.totalorder %s1278_s21, 2 }
  0x48   : > { %204 = sbr.rel (%p908_p4) target bundleno = 94 (0x5e), region = 32 }
  0x4f   : > { %s208_s14 = sand.u32 1, %s1274_s20   ;;  %s965_s15 = sshll.u32 %s1278_s21, 7 }
  0x50   : > { %s909_s10 = sshll.u32 %s208_s14, 6  ;;  %s218_s12 = scalar_lea.hbm %s1593_s0, %s965_s15 }
  0x51   : > { %p1611_p2 = scmp.ne.s32.totalorder %s1605_s28, 0  ;;  %s212_s11 = scalar_lea.vmem [#allocation2], %s909_s10 }
  0x52   : > { %s231_s23 = sshll.u32 %s212_s11, 4  ;;  %s1284_s26 = smov 256   ;;  %s232_s23 = int_to_ptr.vmem [resolvable:$true] %s231_s23 }
  0x53   : > { %s1061_s8 = scalar_select %p1611_p2, [#allocation0], [#allocation11] }
  0x54   : > { %1062 = sst [smem:[#allocation10]] (%p1611_p2), %s1284_s26  ;;  %s1285_s9 = smov 128  }
  0x55   : > { %s223_s25 = sld [smem:[%s1061_s8]]   ;;  %s1286_s27 = smov 2  }
  0x56   : > { %1063 = sst [smem:[#allocation10 + $0x1]] (%p1611_p2), %s1285_s9  ;;  %s1287_s13 = smov 64  }
  0x57   : > { %1064 = sst [smem:[#allocation10 + $0x2]] (%p1611_p2), %s1286_s27  ;;  %s1288_s10 = smov 4  }
  0x58   : > { %1065 = sst [smem:[#allocation10 + $0x3]] (%p1611_p2), %s1287_s13  ;;  %s209_s17 = scalar_lea.sflag [#allocation3], %s208_s14 }
  0x59   : > { %1066 = sst [smem:[#allocation10 + $0x4]] (%p1611_p2), %s1287_s13  ;;  %s1289_s8 = smov [#allocation9]  }
  0x5a   : > { %1067 = sst [smem:[#allocation10 + $0x5]] (%p1611_p2), %s1288_s10 }
  0x5b   : > { %s912_s15 = sshll.u32 %s223_s25, 26 }
  0x5c   : > { %s913_s16 = sadd.s32 134217728, %s912_s15 }
  0x5d   : > { %1068 = dma.general (%p1611_p2), %s218_s12, 1024, %s232_s23, %s209_s17, %s1289_s8, [#allocation10], %s913_s16, 0  }
  0x5e PF: > { %p1612_p3 = scmp.ne.s32.totalorder %s1609_s7, 0 }
  0x5f   : > { %s1472_s11 = sand.u32 (!%p1612_p3), 1, %s1270_s19   ;;  %p1613_p5 = scmp.ne.s32.totalorder (!%p1612_p3), %s1606_s29, 0 }
  0x60   : > { %256 = sbr.rel (%p1612_p3) target bundleno = 606 (0x25e), region = 40  ;;  %s915_s26 = sshll.u32 (!%p1612_p3), %s1472_s11, 6 }
  0x61   : > { %s259_s25 = scalar_lea.sflag (!%p1612_p3), [#allocation3], %s1472_s11  ;;  %s1476_s9 = scalar_lea.vmem (!%p1612_p3), [#allocation2], %s915_s26 }
  0x67   : > { %1253 = dma.done.wait (%p1613_p5), %s259_s25, 1024  }
  0x68   : > { %1255 = vsyncadd (%p1613_p5), %s259_s25, 4294966272  ;;  %p1614_p6 = scmp.eq.s32.totalorder %s1345_s22, 0 }
  0x6a   : > { %1257 = dma.done.wait (%p1614_p6), [#allocation6], 832   ;;  %p1615_p11 = pmov %p1614_p6 }
  0x6b   : > { %vm383_vm0 = vcmask 1040384   ;;  %vm384_vm1 = vcmask 1041408   ;;  %v1290_v0 = vmov 65535   ;;  %v1137_v2 = vld [vmem:[#allocation5] sm:$0xff]   ;;  %vm370_vm2 = vcmask 285696   ;;  %v1138_v3 = vld [vmem:[#allocation5 + $0x8] sm:$0xff]  }
  0x6c   : > { %1259 = vsyncadd (%p1615_p11), [#allocation6], 4294966464  ;;  %v385_v1 = vsel %vm383_vm0, 4294967295, %v1290_v0  ;;  %997 = vmatprep.subr.bf16.mxu0 %v1137_v2  ;;  %v1139_v5 = vld [vmem:[#allocation5 + $0x10] ss:$0 sps:$4 sm:$0x33]  }
  0x6d   : > { %v386_v4 = vsel %vm384_vm1, %v385_v1, 0  ;;  %v1140_v6 = vld [vmem:[%s1476_s9] sm:$0xff]   ;;  %998 = vmatpush3.bf16.msra.mxu0 %v1137_v2  ;;  %v1141_v8 = vld [vmem:[%s1476_s9 + $0x8] sm:$0xff]   ;;  %v1142_v9 = vld [vmem:[%s1476_s9 + $0x10] sm:$0xff]   ;;  %vm491_vm3 = vcmask 523264   ;;  %s918_s12 = sshll.u32 %s1472_s11, 4 }
  0x6e   : > { %999 = vmatprep.subr.bf16.mxu0 %v1138_v3  ;;  %v388_v7 = vand.u32 %v1139_v5, %v386_v4  ;;  %1003 = vmatprep.mubr.msk.bf16.mxu0 %vm370_vm2, %v1140_v6  ;;  %v1148_v10 = vld [vmem:[#allocation7] sm:$0xff]   ;;  %v1490_v11 = vld [vmem:[#allocation7 + $0x8] sm:$0xff]   ;;  %v1145_v14 = vld [vmem:[%s1476_s9 + $0x28] sm:$0xff]   ;;  %s966_s23 = sshll.u32 %s1345_s22, 8  ;;  %s296_s27 = scalar_lea.vmem [#allocation8], %s918_s12 }
  0x6f   : > { %1011 = vmatprep.subr.bf16.mxu1 %v1148_v10  ;;  %v1143_v12 = vld [vmem:[%s1476_s9 + $0x18] sm:$0xff]   ;;  %v1144_v13 = vld [vmem:[%s1476_s9 + $0x20] sm:$0xff]   ;;  %v1146_v15 = vld [vmem:[%s1476_s9 + $0x30] sm:$0xff]   ;;  %s812_s13 = sshll.u32 %s296_s27, 4  ;;  %s1545_s16 = scalar_lea.hbm %s1598_s5, %s966_s23  ;;  %s1547_s13 = int_to_ptr.vmem [resolvable:$true] %s812_s13 }
  0x70   : > { %1012 = vmatpush3.bf16.msra.mxu1 %v1148_v10  ;;  %v1147_v16 = vld [vmem:[%s1476_s9 + $0x38] sm:$0xff]   ;;  %v1150_v17 = vld [vmem:[#allocation7 + $0x10] sm:$0xff]   ;;  %v1151_v18 = vld [vmem:[#allocation7 + $0x18] sm:$0xff]   ;;  %s799_s22 = scalar_lea.sflag [#allocation4], %s1472_s11  ;;  %s1208_s17 = scalar_lea.vmem %s1547_s13, 256 }
  0x71   : > { %1000 = vmatpush3.bf16.msra.mxu0 %v1138_v3  ;;  %1013 = vmatprep.subr.bf16.mxu1 %v1490_v11  ;;  %v1509_v19 = vld [vmem:[%s1595_s2] ss:$0 sm:$0xff]  ;;  %p1209_p12 = scmp.ne.s32.totalorder %s1547_s13, %s1208_s17  ;;  %p1616_p13 = scmp.ne.s32.totalorder %s1607_s30, 0 }
  0x72   : > { %1001 = vmatprep.subr.bf16.mxu0 %v388_v7  ;;  %s1291_s8 = smov [#allocation8]  }
  0x73   : > { %p1210_p0 = pnand %p1209_p12, %p1616_p13  ;;  %s1212_s26 = sshll.u32 %s1291_s8, 4  ;;  %s1213_s26 = int_to_ptr.vmem [resolvable:$false] %s1212_s26 }
  0x74   : > { %1014 = vmatpush3.bf16.msra.mxu1 %v1490_v11  ;;  %s1214_s25 = scalar_lea.vmem %s1213_s26, 512  ;;  %p1215_p8 = scmp.lt.s32.totalorder %s1547_s13, %s1213_s26 }
  0x75   : > { %1002 = vmatpush3.bf16.msra.mxu0 %v388_v7  ;;  %1015 = vmatprep.subr.bf16.mxu1 %v1150_v17  ;;  %p1211_p7 = pneg %p1210_p0  ;;  %p1216_p9 = scmp.lt.s32.totalorder %s1214_s25, %s1208_s17 }
  0x76   : > { %1027 = vmatprep.subr.bf16.mxu0 %v1137_v2 }
  0x77   : > { %p1217_p10 = por %p1216_p9, %p1215_p8 }
  0x78   : > { %1004 = vmatmul.mubr.msk.bf16.vlgmr.msra.gmra.mrb[0].mxu0 %vm370_vm2, %v1141_v8  ;;  %1016 = vmatpush3.bf16.msra.mxu1 %v1150_v17 }
  0x79   : > { %1028 = vmatpush3.bf16.msra.mxu0 %v1137_v2  ;;  %1007 = vmatprep.mubr.msk.bf16.mxu0 %vm370_vm2, %v1142_v9  ;;  %p1218_p1 = pnand %p1217_p10, %p1211_p7 }
  0x7a   : > { %1029 = vmatprep.subr.bf16.mxu0 %v1138_v3  ;;  %1017 = vmatprep.subr.bf16.mxu1 %v1151_v18 }
  0x7c   : > { %1018 = vmatpush3.bf16.msra.mxu1 %v1151_v18 }
  0x7d   : > { %1030 = vmatpush3.bf16.msra.mxu0 %v1138_v3  ;;  %1041 = vmatprep.subr.bf16.mxu1 %v1148_v10 }
  0x7e   : > { %1031 = vmatprep.subr.bf16.mxu0 %v388_v7 }
  0x80   : > { %1008 = vmatmul.mubr.msk.bf16.gmra.mrb[4].mxu0 %vm370_vm2, %v1143_v12  ;;  %v920_v12 = vld [vmem:[%s1597_s4] ss:$0 sm:$0xff] }
  0x81   : > { %1032 = vmatpush3.bf16.msra.mxu0 %v388_v7  ;;  %1033 = vmatprep.mubr.msk.bf16.mxu0 %vm370_vm2, %v1144_v13 }
  0x88   : > { %1034 = vmatmul.mubr.msk.bf16.vlgmr.msra.gmra.mrb[8].mxu0 %vm370_vm2, %v1145_v14 }
  0x89   : > { %1037 = vmatprep.mubr.msk.bf16.mxu0 %vm370_vm2, %v1146_v15 }
  0x90   : > { %1038 = vmatmul.mubr.msk.bf16.gmra.mrb[12].mxu0 %vm370_vm2, %v1147_v16 }
 0x14b   : > { %v1005_v20 = vpop.f32.mrb[0].mxu0 }
 0x14c   : > { %v433_v21 = vadd.f32 %v1005_v20, %v1509_v19  ;;  %v424_v22 = vpop.f32.mrb[1].mxu0 }
 0x14d   : > { %v425_v23 = vadd.f32 %v1509_v19, %v424_v22  ;;  %v1006_v24 = vpop.f32.mrb[2].mxu0 }
 0x14e   : > { %v436_v25 = vadd.f32 %v1006_v24, %v1509_v19  ;;  %v427_v26 = vpop.f32.mrb[3].mxu0  ;;  %v457_v28 = vmax.f32 %v433_v21, 0.0 }
 0x14f   : > { %v428_v27 = vadd.f32 %v1509_v19, %v427_v26  ;;  %v455_v30 = vmax.f32 %v425_v23, 0.0 }
 0x150   : > { %v458_v29 = vmax.f32 %v436_v25, 0.0 }
 0x151   : > { %v456_v31 = vmax.f32 %v428_v27, 0.0 }
 0x152   : > { %v464_v32 = vpack.c.bf16 %v458_v29, %v457_v28 }
 0x153   : > { %v1009_v33 = vpop.f32.mrb[4].mxu0  ;;  %v463_v34 = vpack.c.bf16 %v456_v31, %v455_v30 }
 0x154   : > { %v449_v35 = vadd.f32 %v1009_v33, %v1509_v19  ;;  %v440_v36 = vpop.f32.mrb[5].mxu0 }
 0x155   : > { %v441_v37 = vadd.f32 %v1509_v19, %v440_v36  ;;  %v1010_v38 = vpop.f32.mrb[6].mxu0  ;;  %1019 = vmatprep.mubr.msk.bf16.mxu1 %vm491_vm3, %v463_v34 }
 0x156   : > { %v452_v39 = vadd.f32 %v1010_v38, %v1509_v19  ;;  %v443_v40 = vpop.f32.mrb[7].mxu0  ;;  %1020 = vmatmul.mubr.msk.bf16.vlgmr.msra.gmra.mrb[0].mxu1 %vm491_vm3, %v464_v32  ;;  %v461_v42 = vmax.f32 %v449_v35, 0.0 }
 0x157   : > { %v444_v41 = vadd.f32 %v1509_v19, %v443_v40  ;;  %1042 = vmatpush3.bf16.msra.mxu1 %v1148_v10  ;;  %v459_v44 = vmax.f32 %v441_v37, 0.0 }
 0x158   : > { %v462_v43 = vmax.f32 %v452_v39, 0.0  ;;  %1043 = vmatprep.subr.bf16.mxu1 %v1490_v11 }
 0x159   : > { %v460_v45 = vmax.f32 %v444_v41, 0.0 }
 0x15a   : > { %v466_v46 = vpack.c.bf16 %v462_v43, %v461_v42 }
 0x15b   : > { %v465_v47 = vpack.c.bf16 %v460_v45, %v459_v44  ;;  %v1035_v48 = vpop.f32.mrb[8].mxu0  ;;  %1044 = vmatpush3.bf16.msra.mxu1 %v1490_v11 }
 0x15c   : > { %v669_v49 = vadd.f32 %v1035_v48, %v1509_v19  ;;  %v660_v50 = vpop.f32.mrb[9].mxu0  ;;  %1045 = vmatprep.subr.bf16.mxu1 %v1150_v17 }
 0x15d   : > { %v661_v51 = vadd.f32 %v1509_v19, %v660_v50  ;;  %1023 = vmatprep.mubr.msk.bf16.mxu1 %vm491_vm3, %v465_v47  ;;  %v1036_v52 = vpop.f32.mrb[10].mxu0 }
 0x15e   : > { %v672_v53 = vadd.f32 %v1036_v52, %v1509_v19  ;;  %1024 = vmatmul.mubr.msk.bf16.gmra.mrb[4].mxu1 %vm491_vm3, %v466_v46  ;;  %v663_v54 = vpop.f32.mrb[11].mxu0  ;;  %v693_v56 = vmax.f32 %v669_v49, 0.0 }
 0x15f   : > { %v664_v55 = vadd.f32 %v1509_v19, %v663_v54  ;;  %1046 = vmatpush3.bf16.msra.mxu1 %v1150_v17  ;;  %v691_v58 = vmax.f32 %v661_v51, 0.0 }
 0x160   : > { %v694_v57 = vmax.f32 %v672_v53, 0.0  ;;  %1047 = vmatprep.subr.bf16.mxu1 %v1151_v18 }
 0x161   : > { %v692_v59 = vmax.f32 %v664_v55, 0.0 }
 0x162   : > { %v700_v60 = vpack.c.bf16 %v694_v57, %v693_v56 }
 0x163   : > { %v699_v61 = vpack.c.bf16 %v692_v59, %v691_v58  ;;  %v1039_v62 = vpop.f32.mrb[12].mxu0  ;;  %1048 = vmatpush3.bf16.msra.mxu1 %v1151_v18 }
 0x164   : > { %v685_v63 = vadd.f32 %v1039_v62, %v1509_v19  ;;  %v676_v0 = vpop.f32.mrb[13].mxu0 }
 0x165   : > { %v677_v1 = vadd.f32 %v1509_v19, %v676_v0  ;;  %v1040_v2 = vpop.f32.mrb[14].mxu0  ;;  %1049 = vmatprep.mubr.msk.bf16.mxu1 %vm491_vm3, %v699_v61 }
 0x166   : > { %v688_v3 = vadd.f32 %v1040_v2, %v1509_v19  ;;  %v679_v4 = vpop.f32.mrb[15].mxu0  ;;  %1050 = vmatmul.mubr.msk.bf16.vlgmr.msra.gmra.mrb[8].mxu1 %vm491_vm3, %v700_v60  ;;  %v697_v6 = vmax.f32 %v685_v63, 0.0 }
 0x167   : > { %v680_v5 = vadd.f32 %v1509_v19, %v679_v4  ;;  %v695_v8 = vmax.f32 %v677_v1, 0.0 }
 0x168   : > { %v698_v7 = vmax.f32 %v688_v3, 0.0 }
 0x169   : > { %v696_v9 = vmax.f32 %v680_v5, 0.0 }
 0x16a   : > { %v702_v10 = vpack.c.bf16 %v698_v7, %v697_v6 }
 0x16b   : > { %v701_v11 = vpack.c.bf16 %v696_v9, %v695_v8 }
 0x16d   : > { %1053 = vmatprep.mubr.msk.bf16.mxu1 %vm491_vm3, %v701_v11 }
 0x16e   : > { %1054 = vmatmul.mubr.msk.bf16.gmra.mrb[12].mxu1 %vm491_vm3, %v702_v10 }
 0x229   : > { %v1021_v13 = vpop.f32.mrb[0].mxu1 }
 0x22a   : > { %v547_v14 = vadd.f32 %v1021_v13, %v920_v12  ;;  %v538_v15 = vpop.f32.mrb[1].mxu1 }
 0x22b   : > { %v539_v16 = vadd.f32 %v920_v12, %v538_v15  ;;  %v1022_v17 = vpop.f32.mrb[2].mxu1 }
 0x22c   : > { %v571_v18 = vmax.f32 %v547_v14, 0.0  ;;  %v550_v19 = vadd.f32 %v1022_v17, %v920_v12  ;;  %v541_v20 = vpop.f32.mrb[3].mxu1 }
 0x22d   : > { %v569_v21 = vmax.f32 %v539_v16, 0.0  ;;  %v542_v22 = vadd.f32 %v920_v12, %v541_v20 }
 0x22e   : > { %v572_v23 = vmax.f32 %v550_v19, 0.0 }
 0x22f   : > { %v577_v24 = vmax.f32 %v569_v21, %v571_v18  ;;  %v570_v25 = vmax.f32 %v542_v22, 0.0 }
 0x231   : > { %v578_v26 = vmax.f32 %v570_v25, %v572_v23  ;;  %v1025_v27 = vpop.f32.mrb[4].mxu1 }
 0x232   : > { %v554_v28 = vpop.f32.mrb[5].mxu1  ;;  %v563_v29 = vadd.f32 %v1025_v27, %v920_v12 }
 0x233   : > { %v555_v30 = vadd.f32 %v920_v12, %v554_v28  ;;  %v1026_v31 = vpop.f32.mrb[6].mxu1 }
 0x234   : > { %v557_v32 = vpop.f32.mrb[7].mxu1  ;;  %v566_v34 = vadd.f32 %v1026_v31, %v920_v12  ;;  %v575_v36 = vmax.f32 %v563_v29, 0.0 }
 0x235   : > { %v573_v33 = vmax.f32 %v555_v30, 0.0  ;;  %v558_v35 = vadd.f32 %v920_v12, %v557_v32 }
 0x236   : > { %v576_v40 = vmax.f32 %v566_v34, 0.0 }
 0x237   : > { %v579_v37 = vmax.f32 %v577_v24, %v573_v33  ;;  %v574_v38 = vmax.f32 %v558_v35, 0.0 }
 0x239   : > { %v581_v39 = vmax.f32 %v579_v37, %v575_v36  ;;  %v580_v41 = vmax.f32 %v578_v26, %v574_v38  ;;  %v1051_v42 = vpop.f32.mrb[8].mxu1 }
 0x23a   : > { %v758_v43 = vadd.f32 %v1051_v42, %v920_v12  ;;  %v749_v44 = vpop.f32.mrb[9].mxu1 }
 0x23b   : > { %v582_v45 = vmax.f32 %v580_v41, %v576_v40  ;;  %v750_v46 = vadd.f32 %v920_v12, %v749_v44  ;;  %v1052_v47 = vpop.f32.mrb[10].mxu1  ;;  %v583_v5 = vmax.f32 %v581_v39, 0.0 }
 0x23c   : > { %v782_v48 = vmax.f32 %v758_v43, 0.0  ;;  %v761_v49 = vadd.f32 %v1052_v47, %v920_v12  ;;  %v752_v50 = vpop.f32.mrb[11].mxu1 }
 0x23d   : > { %v780_v51 = vmax.f32 %v750_v46, 0.0  ;;  %v753_v52 = vadd.f32 %v920_v12, %v752_v50  ;;  %v584_v9 = vmax.f32 %v582_v45, 0.0 }
 0x23e   : > { %v783_v53 = vmax.f32 %v761_v49, 0.0 }
 0x23f   : > { %v788_v54 = vmax.f32 %v780_v51, %v782_v48  ;;  %v781_v55 = vmax.f32 %v753_v52, 0.0 }
 0x241   : > { %v789_v56 = vmax.f32 %v781_v55, %v783_v53  ;;  %v1055_v57 = vpop.f32.mrb[12].mxu1 }
 0x242   : > { %v765_v58 = vpop.f32.mrb[13].mxu1  ;;  %v774_v59 = vadd.f32 %v1055_v57, %v920_v12 }
 0x243   : > { %v766_v60 = vadd.f32 %v920_v12, %v765_v58  ;;  %v1056_v61 = vpop.f32.mrb[14].mxu1 }
 0x244   : > { %v768_v62 = vpop.f32.mrb[15].mxu1  ;;  %v777_v0 = vadd.f32 %v1056_v61, %v920_v12  ;;  %v786_v2 = vmax.f32 %v774_v59, 0.0 }
 0x245   : > { %v784_v63 = vmax.f32 %v766_v60, 0.0  ;;  %v769_v1 = vadd.f32 %v920_v12, %v768_v62 }
 0x246   : > { %v787_v7 = vmax.f32 %v777_v0, 0.0 }
 0x247   : > { %v790_v3 = vmax.f32 %v788_v54, %v784_v63  ;;  %v785_v4 = vmax.f32 %v769_v1, 0.0 }
 0x249   : > { %v792_v6 = vmax.f32 %v790_v3, %v786_v2  ;;  %v791_v8 = vmax.f32 %v789_v56, %v785_v4 }
 0x24b   : > { %v794_v10 = vmax.f32 %v583_v5, %v792_v6  ;;  %v793_v11 = vmax.f32 %v791_v8, %v787_v7 }
 0x24d   : > { %796 = vst.msk [vmem:[%s296_s27] sm:$0xff] %vm491_vm3, %v794_v10  ;;  %v795_v12 = vmax.f32 %v584_v9, %v793_v11 }
 0x24f   : > { %797 = vst.msk [vmem:[%s296_s27 + $0x8] sm:$0xff] %vm491_vm3, %v795_v12 }
 0x250   : > { %1221 = shalt.err (!%p1218_p1)
}
 0x251   : > { %s1222_s9 = scalar_lea.hbm %s1545_s16, 256  ;;  %s1226_s7 = scalar_lea.hbm %s1598_s5, 512 }
 0x252   : > { %p1223_p2 = scmp.ne.s32.totalorder %s1545_s16, %s1222_s9  ;;  %p1227_p6 = scmp.lt.u32.totalorder %s1545_s16, %s1598_s5 }
 0x253   : > { %p1228_p11 = scmp.lt.u32.totalorder %s1226_s7, %s1222_s9  ;;  %p1230_p0 = scmp.lt.u32.totalorder %s1222_s9, %s1545_s16 }
 0x254   : > { %p1224_p3 = pnand %p1223_p2, %p1616_p13 }
 0x255   : > { %p1229_p12 = por %p1228_p11, %p1227_p6 }
 0x256   : > { %p1225_p5 = pneg %p1224_p3 }
 0x257   : > { %p1231_p7 = por %p1230_p0, %p1229_p12 }
 0x259   : > { %p1232_p8 = pnand %p1231_p7, %p1225_p5 }
 0x25b   : > { %1235 = shalt.err (!%p1232_p8)
}
 0x25c   : > { %s1292_s23 = smov 128   ;;  %s1293_s27 = smov 8  }
 0x25d   : > { %1074 = dma.vmem_to_hbm [thread:$0]  (%p1616_p13), %s1547_s13, 256, %s1545_s16, %s799_s22, %s1292_s23, %s1292_s23, %s1293_s27  }
 0x25e PF: > { %s827_s15 = sand.u32 1, %s1266_s18   ;;  %p1617_p9 = scmp.ne.s32.totalorder %s1608_s6, 0 }
 0x25f   : > { %s828_s10 = scalar_lea.sflag [#allocation4], %s827_s15 }
 0x260   : > { %p1084_p10 = pnand %p908_p4, %p1617_p9 }
 0x262   : > { %1261 = dma.done.wait (!%p1084_p10), %s828_s10, 256  }
 0x263   : > { %1263 = vsyncadd (!%p1084_p10), %s828_s10, 4294967040  ;;  %s1618_s17 = sld [smem:[#allocation15_spill]]  ;;  %p19_p1 = scmp.ge.s32.totalorder %s1349_s24, 4  }
 0x264   : > { %s1619_s18 = smov %s1270_s19  ;;  %s1620_s19 = smov %s1274_s20 }
 0x265   : > { %s1622_s21 = smov %s1349_s24  ;;  %21 = sbr.rel (!%p19_p1) target bundleno = 6 (0x6), region = 99 }
 0x269   : > { %s1621_s20 = smov %s1618_s17 }
 0x26c   :  { %833 = vsyncpa [#allocation3], 1 }
 0x26d   :  { %835 = vsyncpa [#allocation3 + $0x1], 1 }
 0x26e   :  { %836 = vsyncpa [#allocation6], 1 }
 0x26f   :  { %837 = vsyncpa [#allocation4], 1 }
 0x270   :  { %839 = vsyncpa [#allocation4 + $0x1], 1 }

</bundles_post_ra>
